<compile_context>
chip_gen: v7x
topology: tpu7x:2x2x1
jax: 0.10.0
libtpu: 0.0.40
codegen_flags: <defaults>
</compile_context>

<pallas_src>
import functools
import numpy as np
import jax
import jax.numpy as jnp
from jax.experimental import pallas as pl
from jax.experimental.pallas import tpu as pltpu

FILT_DICT = {
    1: np.array([1.0]),
    2: np.array([1.0, 1.0]),
    3: np.array([1.0, 2.0, 1.0]),
    4: np.array([1.0, 3.0, 3.0, 1.0]),
    5: np.array([1.0, 4.0, 6.0, 4.0, 1.0]),
    6: np.array([1.0, 5.0, 10.0, 10.0, 5.0, 1.0]),
    7: np.array([1.0, 6.0, 15.0, 20.0, 15.0, 6.0, 1.0]),
}

_PAD_MODE = {"refl": "reflect", "reflect": "reflect",
             "repl": "edge", "replicate": "edge", "zero": "constant"}


def _make_filt(channels, filt_size):
    """Same deterministic buffer as the PyTorch module: (C, 1, K, K)."""
    a = np.asarray(FILT_DICT[filt_size], dtype=np.float64)
    f = a[:, None] * a[None, :]
    f = f / f.sum()
    return np.broadcast_to(f[None, None], (channels, 1, filt_size, filt_size)).astype(np.float32)


def _blurpool_kernel(x_ref, o_ref, *, taps, S, K, H, W, Hp, Wp, Ho, Wo, p0, p1, mode):
    """Pad + separable depthwise binomial blur + stride-S subsample.

    x_ref: (S, H, Whr, Cb) with x_ref[q, h, b, c] == x[h, b*S + q, c]
           (raw, unpadded input; channels-last with N folded into lanes;
            W pre-split by stride phase via a free wrapper reshape).
    o_ref: (Ho, Wo, Cb)
    """
    Cb = x_ref.shape[-1]
    Whr = x_ref.shape[2]
    n_hrows = (K - 1) // S + Ho          # padded-H rows needed per H-phase
    Hs = S * n_hrows                     # padded rows materialized in-kernel
    Bmax = (K - 1) // S + Wo             # padded-W cols needed per W-phase

    # ---- static (trace-time) padded-index -> raw-index maps --------------
    def row_map(hp):                     # padded row -> raw row (None = zero)
        h = hp - p0
        if 0 <= h < H:
            return h
        if h < 0:
            if mode == "reflect":
                return min(-h, H - 1)
            if mode == "edge":
                return 0
            return None
        if hp >= Hp:                     # round-up rows: never read by any tap
            return H - 1
        if mode == "reflect":
            return max(2 * H - 2 - h, 0)
        if mode == "edge":
            return H - 1
        return None

    def col_map(wp):                     # padded col -> (raw phase, raw idx)
        w = wp - p0
        if 0 <= w < W:
            return (w % S, w // S)
        if w < 0:
            if mode == "reflect":
                w = min(-w, W - 1)
            elif mode == "edge":
                w = 0
            else:
                return None
        else:
            if wp >= Wp:                 # beyond padded extent: never read
                w = W - 1
            elif mode == "reflect":
                w = max(2 * W - 2 - w, 0)
            elif mode == "edge":
                w = W - 1
            else:
                return None
        return (w % S, w // S)

    # ---- vertical pass: in-kernel H padding + stride-S row taps ----------
    v = []
    for r in range(S):
        xr = x_ref[r]                                    # (H, Whr, Cb)
        pieces, hp = [], 0
        while hp < Hs:                                   # build padded rows
            m = row_map(hp)
            j = hp + 1
            if m is None:
                while j < Hs and row_map(j) is None:
                    j += 1
                pieces.append(jnp.zeros((j - hp, Whr, Cb), xr.dtype))
            else:
                while j < Hs and row_map(j) == m + (j - hp):
                    j += 1
                pieces.append(xr[m:m + (j - hp)])
            hp = j
        xpad = pieces[0] if len(pieces) == 1 else jnp.concatenate(pieces, axis=0)
        xph = xpad.reshape(n_hrows, S, Whr, Cb)          # free leading-dim split

        acc = None                                       # symmetric taps
        for i in range((K + 1) // 2):
            i2 = K - 1 - i
            a = xph[i // S:i // S + Ho, i % S].astype(jnp.float32)
            if i2 != i:
                a = a + xph[i2 // S:i2 // S + Ho, i2 % S].astype(jnp.float32)
            acc = a * taps[i] if acc is None else acc + a * taps[i]
        v.append(acc)                                    # (Ho, Whr, Cb) f32

    # ---- horizontal pass: build padded-W phase views of v, then taps -----
    y = []
    for t in range(S):
        specs = [col_map(b * S + t) for b in range(Bmax)]
        pieces, b = [], 0
        while b < Bmax:
            s0 = specs[b]
            j = b + 1
            if s0 is None:
                while j < Bmax and specs[j] is None:
                    j += 1
                pieces.append(jnp.zeros((Ho, j - b, Cb), jnp.float32))
            else:
                r0, a0 = s0
                while j < Bmax and specs[j] == (r0, a0 + (j - b)):
                    j += 1
                pieces.append(v[r0][:, a0:a0 + (j - b), :])
            b = j
        y.append(pieces[0] if len(pieces) == 1 else jnp.concatenate(pieces, axis=1))

    out = None
    for jt in range((K + 1) // 2):
        j2 = K - 1 - jt
        a = y[jt % S][:, jt // S:jt // S + Wo, :]
        if j2 != jt:
            a = a + y[j2 % S][:, j2 // S:j2 // S + Wo, :]
        out = a * taps[jt] if out is None else out + a * taps[jt]

    o_ref[...] = out.astype(o_ref.dtype)                 # lane-dense store


def blurpool2d(x, channels, pad_type="reflect", filt_size=4, stride=2, pad_off=0):
    N, C, H, W = x.shape
    assert C == channels
    K, S = filt_size, stride
    p0 = (K - 1) // 2 + pad_off
    p1 = int(np.ceil((K - 1) / 2.0)) + pad_off
    mode = _PAD_MODE[pad_type]

    if K == 1:                                           # pure subsample path
        if pad_off == 0:
            return x[:, :, ::S, ::S]
        xp = jnp.pad(x, ((0, 0), (0, 0), (p0, p1), (p0, p1)), mode=mode)
        return xp[:, :, ::S, ::S]

    Hp, Wp = H + p0 + p1, W + p0 + p1
    Ho = (Hp - K) // S + 1
    Wo = (Wp - K) // S + 1

    # Round W up to a multiple of S so the phase-split reshape is free.  The
    # extra columns are never read by any tap (kernel only indexes raw cols < W).
    Wr = -(-W // S) * S
    xt = x
    if Wr > W:
        xt = jnp.pad(xt, ((0, 0), (0, 0), (0, 0), (0, Wr - W)))
    Whr = Wr // S
    NC = N * C

    # Single input-side layout pass: NCHW -> (W-phase, H, W//S, N*C).
    # Both reshapes are metadata-only; the transpose is the one HBM pass.
    xps = xt.reshape(N, C, H, Whr, S).transpose(4, 2, 3, 0, 1).reshape(S, H, Whr, NC)

    a = np.asarray(FILT_DICT[K], dtype=np.float64)
    taps = tuple((a / a.sum()).tolist())                 # separable 1-D taps

    # ---- VMEM-aware blocking over the fused (N*C) lane axis ----------------
    isz = jnp.dtype(x.dtype).itemsize
    Hs = S * ((K - 1) // S + Ho)
    Bmax = (K - 1) // S + Wo
    bytes_per_lane = (
        2 * S * H * Whr * isz            # double-buffered input block
        + 2 * Ho * Wo * isz              # double-buffered output block
        + Hs * Whr * isz                 # in-kernel H-padded copy (one phase live)
        + S * Ho * Whr * 4               # f32 vertical-pass results
        + S * Ho * Bmax * 4              # f32 padded-W phase views
        + Ho * Wo * 4                    # f32 accumulator
    )
    try:
        vmem_cap = int(getattr(pltpu.get_tpu_info(), "vmem_capacity_bytes",
                               64 * 1024 * 1024))
    except Exception:
        vmem_cap = 64 * 1024 * 1024      # conservative (v7x per-TC VMEM)
    budget = vmem_cap // 4
    if NC <= 128 or NC * bytes_per_lane <= budget:
        Cb = NC
    else:
        Cb = min(NC, max(128, (budget // bytes_per_lane) // 128 * 128))
        # TODO(synk): if even a 128-lane block exceeds the budget (huge spatial
        # extents), switch to an H-block grid axis with a (K-1)//S-row halo.
    n_cb = pl.cdiv(NC, Cb)
    if n_cb == 1 and NC >= 256:          # feed both v7x TensorCores
        Cb = ((NC + 255) // 256) * 128
        n_cb = pl.cdiv(NC, Cb)
    vmem_limit = min(vmem_cap * 3 // 4, 96 * 1024 * 1024)

    kernel = functools.partial(
        _blurpool_kernel, taps=taps, S=S, K=K, H=H, W=W, Hp=Hp, Wp=Wp,
        Ho=Ho, Wo=Wo, p0=p0, p1=p1, mode=mode)

    out_hwc = pl.pallas_call(
        kernel,
        out_shape=jax.ShapeDtypeStruct((Ho, Wo, NC), x.dtype),
        grid=(n_cb,),
        in_specs=[pl.BlockSpec((S, H, Whr, Cb), lambda cb: (0, 0, 0, cb))],
        out_specs=pl.BlockSpec((Ho, Wo, Cb), lambda cb: (0, 0, cb)),
        compiler_params=pltpu.CompilerParams(
            dimension_semantics=("parallel",),
            vmem_limit_bytes=vmem_limit,
        ),
    )(xps)

    # Back to the module's NCHW contract (output is 1/S^2 of the input bytes).
    return out_hwc.reshape(Ho, Wo, N, C).transpose(2, 3, 0, 1)


def blurpool2d_ref(x, channels, pad_type="reflect", filt_size=4, stride=2, pad_off=0):
    """Pure-JAX reference (mirrors F.conv2d(self.pad(inp), filt, stride, groups=C))."""
    p0 = (filt_size - 1) // 2 + pad_off
    p1 = int(np.ceil((filt_size - 1) / 2.0)) + pad_off
    xp = jnp.pad(x, ((0, 0), (0, 0), (p0, p1), (p0, p1)), mode=_PAD_MODE[pad_type])
    filt = jnp.asarray(_make_filt(channels, filt_size))
    return jax.lax.conv_general_dilated(
        xp, filt, window_strides=(stride, stride), padding="VALID",
        dimension_numbers=("NCHW", "OIHW", "NCHW"), feature_group_count=channels)


if __name__ == "__main__":
    fn = jax.jit(blurpool2d,
                 static_argnames=("channels", "pad_type", "filt_size", "stride", "pad_off"))

    # Primary config (module defaults: reflect pad, filt_size=4, stride=2).
    x = jax.random.normal(jax.random.PRNGKey(0), (2, 4, 16, 16), dtype=jnp.float32)
    out = jax.block_until_ready(fn(x, channels=4))
    assert out.shape == (2, 4, 8, 8), out.shape
    ref = blurpool2d_ref(x, channels=4)
    np.testing.assert_allclose(np.asarray(out), np.asarray(ref), rtol=1e-5, atol=1e-5)

    # Odd spatial dims (exercises the stride-rounding path) + odd filter size.
    x2 = jax.random.normal(jax.random.PRNGKey(1), (1, 3, 7, 9), dtype=jnp.float32)
    out2 = jax.block_until_ready(fn(x2, channels=3, filt_size=5, stride=2))
    ref2 = blurpool2d_ref(x2, channels=3, filt_size=5, stride=2)
    np.testing.assert_allclose(np.asarray(out2), np.asarray(ref2), rtol=1e-5, atol=1e-5)

    # Replication padding + filt_size=3.
    x3 = jax.random.normal(jax.random.PRNGKey(2), (2, 5, 10, 12), dtype=jnp.float32)
    out3 = jax.block_until_ready(fn(x3, channels=5, pad_type="replicate",
                                    filt_size=3, stride=2))
    ref3 = blurpool2d_ref(x3, channels=5, pad_type="replicate", filt_size=3, stride=2)
    np.testing.assert_allclose(np.asarray(out3), np.asarray(ref3), rtol=1e-5, atol=1e-5)

    print("KERNEL_OK")
</pallas_src>

<mosaic_0001>
module attributes {stable_mosaic.version = 11 : i64} {
  func.func @_blurpool_kernel(%arg0: i32, %arg1: memref<2x16x8x8xf32, #tpu.memory_space<vmem>>, %arg2: memref<8x8x8xf32, #tpu.memory_space<vmem>>) attributes {dimension_semantics = [#tpu.dimension_semantics<parallel>], iteration_bounds = array<i64: 1>, scalar_prefetch = 0 : i64, scratch_operands = 0 : i64, tpu.core_type = #tpu.core_type<tc>, window_params = [{transform_indices = @transform_0, window_bounds = array<i64: 2, 16, 8, 8>}, {transform_indices = @transform_1, window_bounds = array<i64: 8, 8, 8>}]} {
    %c0 = arith.constant 0 : index
    %c0_0 = arith.constant 0 : index
    %c0_1 = arith.constant 0 : index
    %c0_2 = arith.constant 0 : index
    %0 = vector.load %arg1[%c0, %c0_0, %c0_1, %c0_2] : memref<2x16x8x8xf32, #tpu.memory_space<vmem>>, vector<1x16x8x8xf32>
    %1 = vector.shape_cast %0 : vector<1x16x8x8xf32> to vector<16x8x8xf32>
    %2 = vector.extract_strided_slice %1 {offsets = [1, 0, 0], sizes = [1, 8, 8], strides = [1, 1, 1]} : vector<16x8x8xf32> to vector<1x8x8xf32>
    %3 = vector.extract_strided_slice %1 {offsets = [14, 0, 0], sizes = [1, 8, 8], strides = [1, 1, 1]} : vector<16x8x8xf32> to vector<1x8x8xf32>
    %4 = tpu.concatenate %2, %1, %3 in 0 : vector<1x8x8xf32>, vector<16x8x8xf32>, vector<1x8x8xf32> -> vector<18x8x8xf32>
    %5 = vector.shape_cast %4 : vector<18x8x8xf32> to vector<9x2x8x8xf32>
    %6 = vector.extract_strided_slice %5 {offsets = [0, 0, 0, 0], sizes = [8, 1, 8, 8], strides = [1, 1, 1, 1]} : vector<9x2x8x8xf32> to vector<8x1x8x8xf32>
    %7 = vector.shape_cast %6 : vector<8x1x8x8xf32> to vector<8x8x8xf32>
    %8 = vector.extract_strided_slice %5 {offsets = [1, 1, 0, 0], sizes = [8, 1, 8, 8], strides = [1, 1, 1, 1]} : vector<9x2x8x8xf32> to vector<8x1x8x8xf32>
    %9 = vector.shape_cast %8 : vector<8x1x8x8xf32> to vector<8x8x8xf32>
    %10 = arith.addf %7, %9 : vector<8x8x8xf32>
    %cst = arith.constant 1.250000e-01 : f32
    %11 = vector.broadcast %cst : f32 to vector<8x8x8xf32>
    %12 = arith.mulf %10, %11 : vector<8x8x8xf32>
    %13 = vector.extract_strided_slice %5 {offsets = [0, 1, 0, 0], sizes = [8, 1, 8, 8], strides = [1, 1, 1, 1]} : vector<9x2x8x8xf32> to vector<8x1x8x8xf32>
    %14 = vector.shape_cast %13 : vector<8x1x8x8xf32> to vector<8x8x8xf32>
    %15 = vector.extract_strided_slice %5 {offsets = [1, 0, 0, 0], sizes = [8, 1, 8, 8], strides = [1, 1, 1, 1]} : vector<9x2x8x8xf32> to vector<8x1x8x8xf32>
    %16 = vector.shape_cast %15 : vector<8x1x8x8xf32> to vector<8x8x8xf32>
    %17 = arith.addf %14, %16 : vector<8x8x8xf32>
    %cst_3 = arith.constant 3.750000e-01 : f32
    %18 = vector.broadcast %cst_3 : f32 to vector<8x8x8xf32>
    %19 = arith.mulf %17, %18 : vector<8x8x8xf32>
    %20 = arith.addf %12, %19 : vector<8x8x8xf32>
    %c1 = arith.constant 1 : index
    %c0_4 = arith.constant 0 : index
    %c0_5 = arith.constant 0 : index
    %c0_6 = arith.constant 0 : index
    %21 = vector.load %arg1[%c1, %c0_4, %c0_5, %c0_6] : memref<2x16x8x8xf32, #tpu.memory_space<vmem>>, vector<1x16x8x8xf32>
    %22 = vector.shape_cast %21 : vector<1x16x8x8xf32> to vector<16x8x8xf32>
    %23 = vector.extract_strided_slice %22 {offsets = [1, 0, 0], sizes = [1, 8, 8], strides = [1, 1, 1]} : vector<16x8x8xf32> to vector<1x8x8xf32>
    %24 = vector.extract_strided_slice %22 {offsets = [14, 0, 0], sizes = [1, 8, 8], strides = [1, 1, 1]} : vector<16x8x8xf32> to vector<1x8x8xf32>
    %25 = tpu.concatenate %23, %22, %24 in 0 : vector<1x8x8xf32>, vector<16x8x8xf32>, vector<1x8x8xf32> -> vector<18x8x8xf32>
    %26 = vector.shape_cast %25 : vector<18x8x8xf32> to vector<9x2x8x8xf32>
    %27 = vector.extract_strided_slice %26 {offsets = [0, 0, 0, 0], sizes = [8, 1, 8, 8], strides = [1, 1, 1, 1]} : vector<9x2x8x8xf32> to vector<8x1x8x8xf32>
    %28 = vector.shape_cast %27 : vector<8x1x8x8xf32> to vector<8x8x8xf32>
    %29 = vector.extract_strided_slice %26 {offsets = [1, 1, 0, 0], sizes = [8, 1, 8, 8], strides = [1, 1, 1, 1]} : vector<9x2x8x8xf32> to vector<8x1x8x8xf32>
    %30 = vector.shape_cast %29 : vector<8x1x8x8xf32> to vector<8x8x8xf32>
    %31 = arith.addf %28, %30 : vector<8x8x8xf32>
    %cst_7 = arith.constant 1.250000e-01 : f32
    %32 = vector.broadcast %cst_7 : f32 to vector<8x8x8xf32>
    %33 = arith.mulf %31, %32 : vector<8x8x8xf32>
    %34 = vector.extract_strided_slice %26 {offsets = [0, 1, 0, 0], sizes = [8, 1, 8, 8], strides = [1, 1, 1, 1]} : vector<9x2x8x8xf32> to vector<8x1x8x8xf32>
    %35 = vector.shape_cast %34 : vector<8x1x8x8xf32> to vector<8x8x8xf32>
    %36 = vector.extract_strided_slice %26 {offsets = [1, 0, 0, 0], sizes = [8, 1, 8, 8], strides = [1, 1, 1, 1]} : vector<9x2x8x8xf32> to vector<8x1x8x8xf32>
    %37 = vector.shape_cast %36 : vector<8x1x8x8xf32> to vector<8x8x8xf32>
    %38 = arith.addf %35, %37 : vector<8x8x8xf32>
    %cst_8 = arith.constant 3.750000e-01 : f32
    %39 = vector.broadcast %cst_8 : f32 to vector<8x8x8xf32>
    %40 = arith.mulf %38, %39 : vector<8x8x8xf32>
    %41 = arith.addf %33, %40 : vector<8x8x8xf32>
    %42 = vector.extract_strided_slice %41 {offsets = [0, 0, 0], sizes = [8, 1, 8], strides = [1, 1, 1]} : vector<8x8x8xf32> to vector<8x1x8xf32>
    %43 = tpu.concatenate %42, %41 in 1 : vector<8x1x8xf32>, vector<8x8x8xf32> -> vector<8x9x8xf32>
    %44 = vector.extract_strided_slice %20 {offsets = [0, 7, 0], sizes = [8, 1, 8], strides = [1, 1, 1]} : vector<8x8x8xf32> to vector<8x1x8xf32>
    %45 = tpu.concatenate %20, %44 in 1 : vector<8x8x8xf32>, vector<8x1x8xf32> -> vector<8x9x8xf32>
    %46 = vector.extract_strided_slice %43 {offsets = [0, 0, 0], sizes = [8, 8, 8], strides = [1, 1, 1]} : vector<8x9x8xf32> to vector<8x8x8xf32>
    %47 = vector.extract_strided_slice %45 {offsets = [0, 1, 0], sizes = [8, 8, 8], strides = [1, 1, 1]} : vector<8x9x8xf32> to vector<8x8x8xf32>
    %48 = arith.addf %46, %47 : vector<8x8x8xf32>
    %cst_9 = arith.constant 1.250000e-01 : f32
    %49 = vector.broadcast %cst_9 : f32 to vector<8x8x8xf32>
    %50 = arith.mulf %48, %49 : vector<8x8x8xf32>
    %51 = vector.extract_strided_slice %45 {offsets = [0, 0, 0], sizes = [8, 8, 8], strides = [1, 1, 1]} : vector<8x9x8xf32> to vector<8x8x8xf32>
    %52 = vector.extract_strided_slice %43 {offsets = [0, 1, 0], sizes = [8, 8, 8], strides = [1, 1, 1]} : vector<8x9x8xf32> to vector<8x8x8xf32>
    %53 = arith.addf %51, %52 : vector<8x8x8xf32>
    %cst_10 = arith.constant 3.750000e-01 : f32
    %54 = vector.broadcast %cst_10 : f32 to vector<8x8x8xf32>
    %55 = arith.mulf %53, %54 : vector<8x8x8xf32>
    %56 = arith.addf %50, %55 : vector<8x8x8xf32>
    %c0_11 = arith.constant 0 : index
    %c0_12 = arith.constant 0 : index
    %c0_13 = arith.constant 0 : index
    %57 = vector.load %arg2[%c0_11, %c0_12, %c0_13] : memref<8x8x8xf32, #tpu.memory_space<vmem>>, vector<8x8x8xf32>
    tpu.vector_store %arg2[%c0_11, %c0_12, %c0_13], %56 {strides = array<i32>} : memref<8x8x8xf32, #tpu.memory_space<vmem>>, vector<8x8x8xf32>,
    return
  }
  func.func @transform_0(%arg0: i32) -> (i32, i32, i32, i32) {
    %c0_i32 = arith.constant 0 : i32
    %c0_i32_0 = arith.constant 0 : i32
    %c0_i32_1 = arith.constant 0 : i32
    %c0_i32_2 = arith.constant 0 : i32
    return %c0_i32, %c0_i32_0, %c0_i32_1, %arg0 : i32, i32, i32, i32
  }
  func.func @transform_1(%arg0: i32) -> (i32, i32, i32) {
    %c0_i32 = arith.constant 0 : i32
    %c0_i32_0 = arith.constant 0 : i32
    %c0_i32_1 = arith.constant 0 : i32
    return %c0_i32, %c0_i32_0, %arg0 : i32, i32, i32
  }
}

</mosaic_0001>

<bundles_post_ra>
// kernel: blurpool2d.1
= control target key start
LH: loop header
LB: loop body
LE: loop exit
PB: predicated region body
PF: predicated region fallthrough
CT: control target
= control target key end

     0   :  { %vm145_vm0 = vcmask 1040384   ;;  %vm170_vm1 = vcmask 1046528   ;;  %vm283_vm2 = vcmask 64512   ;;  %s482_s0 = inlined_call_operand.vmem [shape: f32[2,16,8,8], index: 0, kind: input, shape index: {}]   ;;  %s483_s1 = inlined_call_operand.vmem [shape: f32[8,8,8], index: 1, kind: output, shape index: {}]  }
   0x1   :  { %v8_v0 = vld [vmem:[%s482_s0] sm:$0xff]  ;;  %v9_v1 = vld [vmem:[%s482_s0 + $0x8] sm:$0xff]  ;;  %v10_v2 = vld [vmem:[%s482_s0 + $0x10] sm:$0xff] }
   0x2   :  { %v24_v3 = vadd.f32 %v10_v2, %v9_v1  ;;  %v40_v4 = vadd.f32 %v9_v1, %v8_v0  ;;  %v296_v5 = vld [vmem:[%s482_s0 + $0x80] sm:$0xff]  ;;  %v297_v6 = vld [vmem:[%s482_s0 + $0x88] sm:$0xff]  ;;  %v298_v7 = vld [vmem:[%s482_s0 + $0x90] sm:$0xff] }
   0x3   :  { %v81_v8 = vadd.f32 %v298_v7, %v297_v6  ;;  %v97_v9 = vadd.f32 %v297_v6, %v296_v5  ;;  %v11_v10 = vld [vmem:[%s482_s0 + $0x18] sm:$0xff]  ;;  %v12_v11 = vld [vmem:[%s482_s0 + $0x20] sm:$0xff]  ;;  %v13_v18 = vld [vmem:[%s482_s0 + $0x28] sm:$0xff] }
   0x4   :  { %v299_v12 = vld [vmem:[%s482_s0 + $0x98] sm:$0xff]  ;;  %v32_v13 = vmul.f32 0.125, %v24_v3  ;;  %v48_v14 = vmul.f32 0.375, %v40_v4  ;;  %v25_v15 = vadd.f32 %v12_v11, %v9_v1  ;;  %v41_v16 = vadd.f32 %v11_v10, %v10_v2  ;;  %v300_v17 = vld [vmem:[%s482_s0 + $0xa0] sm:$0xff]  ;;  %v14_v19 = vld [vmem:[%s482_s0 + $0x30] sm:$0xff] }
   0x5   :  { %v89_v20 = vmul.f32 0.125, %v81_v8  ;;  %v105_v21 = vmul.f32 0.375, %v97_v9  ;;  %v82_v22 = vadd.f32 %v300_v17, %v297_v6  ;;  %v98_v23 = vadd.f32 %v299_v12, %v298_v7  ;;  %v302_v24 = vld [vmem:[%s482_s0 + $0xb0] sm:$0xff]  ;;  %v301_v29 = vld [vmem:[%s482_s0 + $0xa8] sm:$0xff]  ;;  %v16_v34 = vld [vmem:[%s482_s0 + $0x40] sm:$0xff] }
   0x6   :  { %v56_v25 = vadd.f32 %v48_v14, %v32_v13  ;;  %v33_v26 = vmul.f32 0.125, %v25_v15  ;;  %v49_v27 = vmul.f32 0.375, %v41_v16  ;;  %v26_v28 = vadd.f32 %v14_v19, %v11_v10  ;;  %v15_v55 = vld [vmem:[%s482_s0 + $0x38] sm:$0xff]  ;;  %v304_v61 = vld [vmem:[%s482_s0 + $0xc0] sm:$0xff]  ;;  %v17_v6 = vld [vmem:[%s482_s0 + $0x48] sm:$0xff] }
   0x7   :  { %v113_v30 = vadd.f32 %v105_v21, %v89_v20  ;;  %v90_v31 = vmul.f32 0.125, %v82_v22  ;;  %v106_v32 = vmul.f32 0.375, %v98_v23  ;;  %v42_v33 = vadd.f32 %v13_v18, %v12_v11  ;;  %v303_v60 = vld [vmem:[%s482_s0 + $0xb8] sm:$0xff]  ;;  %v18_v7 = vld [vmem:[%s482_s0 + $0x50] sm:$0xff] }
   0x8   :  { %v171_v35 = vrot.slane %v56_v25, 1  ;;  %v57_v36 = vadd.f32 %v49_v27, %v33_v26  ;;  %v34_v37 = vmul.f32 0.125, %v26_v28  ;;  %v83_v38 = vadd.f32 %v302_v24, %v299_v12  ;;  %v306_v20 = vld [vmem:[%s482_s0 + $0xd0] sm:$0xff] }
   0x9   :  { %v129_v39 = vrot.slane %v113_v30, 7  ;;  %v114_v40 = vadd.f32 %v106_v32, %v90_v31  ;;  %v50_v41 = vmul.f32 0.375, %v42_v33  ;;  %v99_v42 = vadd.f32 %v301_v29, %v300_v17 }
   0xa   :  { %v173_v43 = vsel %vm170_vm1, %v171_v35, %v56_v25  ;;  %v174_v44 = vrot.slane %v57_v36, 1  ;;  %v91_v45 = vmul.f32 0.125, %v83_v38  ;;  %v27_v46 = vadd.f32 %v16_v34, %v13_v18 }
   0xb   :  { %v146_v47 = vsel %vm145_vm0, %v113_v30, %v129_v39  ;;  %v228_v48 = vrot.slane %v129_v39, 1  ;;  %v130_v49 = vrot.slane %v114_v40, 7  ;;  %v58_v50 = vadd.f32 %v50_v41, %v34_v37 }
   0xc   :  { %v203_v51 = vadd.f32 %v173_v43, %v146_v47  ;;  %v227_v52 = vrot.slane %v146_v47, 1  ;;  %v176_v53 = vsel %vm170_vm1, %v174_v44, %v57_v36  ;;  %v107_v54 = vmul.f32 0.375, %v99_v42  ;;  %v19_v43 = vld [vmem:[%s482_s0 + $0x58] sm:$0xff]  ;;  %v308_v44 = vld [vmem:[%s482_s0 + $0xe0] sm:$0xff] }
   0xd   :  { %v147_v56 = vsel %vm145_vm0, %v114_v40, %v130_v49  ;;  %v231_v57 = vrot.slane %v130_v49, 1  ;;  %v177_v58 = vrot.slane %v58_v50, 1  ;;  %v35_v59 = vmul.f32 0.125, %v27_v46 }
   0xe   :  { %v211_v62 = vmul.f32 0.125, %v203_v51  ;;  %v229_v63 = vsel %vm170_vm1, %v227_v52, %v228_v48  ;;  %v204_v0 = vadd.f32 %v176_v53, %v147_v56  ;;  %v230_v1 = vrot.slane %v147_v56, 1  ;;  %v307_v56 = vld [vmem:[%s482_s0 + $0xd8] sm:$0xff] }
   0xf   :  { %v259_v2 = vadd.f32 %v229_v63, %v56_v25  ;;  %v115_v3 = vadd.f32 %v107_v54, %v91_v45  ;;  %v179_v4 = vsel %vm170_vm1, %v177_v58, %v58_v50  ;;  %v43_v5 = vadd.f32 %v15_v55, %v14_v19  ;;  %v21_v58 = vld [vmem:[%s482_s0 + $0x68] sm:$0xff] }
  0x10   :  { %v212_v8 = vmul.f32 0.125, %v204_v0  ;;  %v232_v9 = vsel %vm170_vm1, %v230_v1, %v231_v57  ;;  %v84_v10 = vadd.f32 %v304_v61, %v301_v29  ;;  %v100_v11 = vadd.f32 %v303_v60, %v302_v24  ;;  %v305_v29 = vld [vmem:[%s482_s0 + $0xc8] sm:$0xff]  ;;  %v310_v1 = vld [vmem:[%s482_s0 + $0xf0] sm:$0xff] }
  0x11   :  { %v267_v12 = vmul.f32 0.375, %v259_v2  ;;  %v260_v13 = vadd.f32 %v232_v9, %v57_v36  ;;  %v131_v14 = vrot.slane %v115_v3, 7  ;;  %v51_v15 = vmul.f32 0.375, %v43_v5  ;;  %v309_v0 = vld [vmem:[%s482_s0 + $0xe8] sm:$0xff] }
  0x12   :  { %v92_v16 = vmul.f32 0.125, %v84_v10  ;;  %v108_v17 = vmul.f32 0.375, %v100_v11  ;;  %v28_v18 = vadd.f32 %v18_v7, %v15_v55  ;;  %v44_v19 = vadd.f32 %v17_v6, %v16_v34  ;;  %v20_v34 = vld [vmem:[%s482_s0 + $0x60] sm:$0xff] }
  0x13   :  { %v275_v21 = vadd.f32 %v267_v12, %v211_v62  ;;  %v268_v22 = vmul.f32 0.375, %v260_v13  ;;  %v148_v23 = vsel %vm145_vm0, %v115_v3, %v131_v14  ;;  %v234_v25 = vrot.slane %v131_v14, 1 }
  0x14   :  { %v205_v26 = vadd.f32 %v179_v4, %v148_v23  ;;  %v233_v27 = vrot.slane %v148_v23, 1  ;;  %v59_v24 = vadd.f32 %v51_v15, %v35_v59  ;;  %v116_v28 = vadd.f32 %v108_v17, %v92_v16  ;;  %v22_v59 = vld [vmem:[%s482_s0 + $0x70] sm:$0xff] }
  0x15   :  { %284 = vst.msk [vmem:[%s483_s1] sm:$0xff] %vm283_vm2, %v275_v21  ;;  %v276_v30 = vadd.f32 %v268_v22, %v212_v8  ;;  %v36_v31 = vmul.f32 0.125, %v28_v18  ;;  %v52_v32 = vmul.f32 0.375, %v44_v19  ;;  %v85_v33 = vadd.f32 %v306_v20, %v303_v60 }
  0x16   :  { %v213_v35 = vmul.f32 0.125, %v205_v26  ;;  %v235_v36 = vsel %vm170_vm1, %v233_v27, %v234_v25  ;;  %v132_v37 = vrot.slane %v116_v28, 7  ;;  %v180_v38 = vrot.slane %v59_v24, 1 }
  0x17   :  { %285 = vst.msk [vmem:[%s483_s1 + $0x8] sm:$0xff] %vm283_vm2, %v276_v30  ;;  %v261_v39 = vadd.f32 %v235_v36, %v58_v50  ;;  %v60_v40 = vadd.f32 %v52_v32, %v36_v31  ;;  %v93_v41 = vmul.f32 0.125, %v85_v33  ;;  %v101_v42 = vadd.f32 %v305_v29, %v304_v61 }
  0x18   :  { %v149_v45 = vsel %vm145_vm0, %v116_v28, %v132_v37  ;;  %v182_v46 = vsel %vm170_vm1, %v180_v38, %v59_v24  ;;  %v237_v47 = vrot.slane %v132_v37, 1  ;;  %v29_v48 = vadd.f32 %v20_v34, %v17_v6 }
  0x19   :  { %v269_v49 = vmul.f32 0.375, %v261_v39  ;;  %v206_v51 = vadd.f32 %v182_v46, %v149_v45  ;;  %v236_v50 = vrot.slane %v149_v45, 1  ;;  %v109_v52 = vmul.f32 0.375, %v101_v42 }
  0x1a   :  { %v183_v53 = vrot.slane %v60_v40, 1  ;;  %v37_v54 = vmul.f32 0.125, %v29_v48  ;;  %v45_v55 = vadd.f32 %v19_v43, %v18_v7  ;;  %v86_v57 = vadd.f32 %v308_v44, %v305_v29 }
  0x1b   :  { %v277_v60 = vadd.f32 %v269_v49, %v213_v35  ;;  %v214_v61 = vmul.f32 0.125, %v206_v51  ;;  %v238_v62 = vsel %vm170_vm1, %v236_v50, %v237_v47  ;;  %v117_v63 = vadd.f32 %v109_v52, %v93_v41 }
  0x1c   :  { %v262_v2 = vadd.f32 %v238_v62, %v59_v24  ;;  %v185_v3 = vsel %vm170_vm1, %v183_v53, %v60_v40  ;;  %v53_v4 = vmul.f32 0.375, %v45_v55  ;;  %v94_v5 = vmul.f32 0.125, %v86_v57  ;;  %v311_v24 = vld [vmem:[%s482_s0 + $0xf8] sm:$0xff] }
  0x1d   :  { %286 = vst.msk [vmem:[%s483_s1 + $0x10] sm:$0xff] %vm283_vm2, %v277_v60  ;;  %v133_v6 = vrot.slane %v117_v63, 7  ;;  %v102_v7 = vadd.f32 %v307_v56, %v306_v20  ;;  %v30_v8 = vadd.f32 %v22_v59, %v19_v43  ;;  %v46_v9 = vadd.f32 %v21_v58, %v20_v34  ;;  %v23_v20 = vld [vmem:[%s482_s0 + $0x78] sm:$0xff] }
  0x1e   :  { %v270_v10 = vmul.f32 0.375, %v262_v2  ;;  %v61_v11 = vadd.f32 %v53_v4, %v37_v54  ;;  %v87_v12 = vadd.f32 %v310_v1, %v307_v56  ;;  %v103_v13 = vadd.f32 %v309_v0, %v308_v44 }
  0x1f   :  { %v150_v14 = vsel %vm145_vm0, %v117_v63, %v133_v6  ;;  %v240_v15 = vrot.slane %v133_v6, 1  ;;  %v110_v16 = vmul.f32 0.375, %v102_v7  ;;  %v38_v17 = vmul.f32 0.125, %v30_v8 }
  0x20   :  { %v278_v18 = vadd.f32 %v270_v10, %v214_v61  ;;  %v207_v19 = vadd.f32 %v185_v3, %v150_v14  ;;  %v239_v21 = vrot.slane %v150_v14, 1  ;;  %v186_v22 = vrot.slane %v61_v11, 1 }
  0x21   :  { %v118_v23 = vadd.f32 %v110_v16, %v94_v5  ;;  %v54_v25 = vmul.f32 0.375, %v46_v9  ;;  %v95_v26 = vmul.f32 0.125, %v87_v12  ;;  %v111_v27 = vmul.f32 0.375, %v103_v13 }
  0x22   :  { %287 = vst.msk [vmem:[%s483_s1 + $0x18] sm:$0xff] %vm283_vm2, %v278_v18  ;;  %v215_v28 = vmul.f32 0.125, %v207_v19  ;;  %v241_v29 = vsel %vm170_vm1, %v239_v21, %v240_v15  ;;  %v188_v30 = vsel %vm170_vm1, %v186_v22, %v61_v11  ;;  %v31_v31 = vadd.f32 %v22_v59, %v21_v58 }
  0x23   :  { %v263_v32 = vadd.f32 %v241_v29, %v60_v40  ;;  %v134_v33 = vrot.slane %v118_v23, 7  ;;  %v62_v34 = vadd.f32 %v54_v25, %v38_v17  ;;  %v119_v35 = vadd.f32 %v111_v27, %v95_v26 }
  0x24   :  { %v39_v36 = vmul.f32 0.125, %v31_v31  ;;  %v47_v37 = vadd.f32 %v23_v20, %v22_v59  ;;  %v88_v38 = vadd.f32 %v310_v1, %v309_v0  ;;  %v104_v39 = vadd.f32 %v311_v24, %v310_v1 }
  0x25   :  { %v271_v41 = vmul.f32 0.375, %v263_v32  ;;  %v151_v42 = vsel %vm145_vm0, %v118_v23, %v134_v33  ;;  %v243_v43 = vrot.slane %v134_v33, 1  ;;  %v135_v44 = vrot.slane %v119_v35, 7 }
  0x26   :  { %v208_v45 = vadd.f32 %v188_v30, %v151_v42  ;;  %v242_v46 = vrot.slane %v151_v42, 1  ;;  %v189_v47 = vrot.slane %v62_v34, 1  ;;  %v55_v48 = vmul.f32 0.375, %v47_v37 }
  0x27   :  { %v279_v49 = vadd.f32 %v271_v41, %v215_v28  ;;  %v152_v51 = vsel %vm145_vm0, %v119_v35, %v135_v44  ;;  %v246_v40 = vrot.slane %v135_v44, 1  ;;  %v96_v50 = vmul.f32 0.125, %v88_v38 }
  0x28   :  { %v216_v52 = vmul.f32 0.125, %v208_v45  ;;  %v244_v53 = vsel %vm170_vm1, %v242_v46, %v243_v43  ;;  %v191_v54 = vsel %vm170_vm1, %v189_v47, %v62_v34  ;;  %v245_v55 = vrot.slane %v152_v51, 1 }
  0x29   :  { %288 = vst.msk [vmem:[%s483_s1 + $0x20] sm:$0xff] %vm283_vm2, %v279_v49  ;;  %v264_v56 = vadd.f32 %v244_v53, %v61_v11  ;;  %v209_v57 = vadd.f32 %v191_v54, %v152_v51  ;;  %v63_v58 = vadd.f32 %v55_v48, %v39_v36  ;;  %v112_v59 = vmul.f32 0.375, %v104_v39 }
  0x2a   :  { %v247_v60 = vsel %vm170_vm1, %v245_v55, %v246_v40 }
  0x2b   :  { %v272_v61 = vmul.f32 0.375, %v264_v56  ;;  %v217_v62 = vmul.f32 0.125, %v209_v57  ;;  %v265_v63 = vadd.f32 %v247_v60, %v62_v34  ;;  %v120_v0 = vadd.f32 %v112_v59, %v96_v50 }
  0x2c   :  { %v192_v1 = vrot.slane %v63_v58, 1 }
  0x2d   :  { %v280_v2 = vadd.f32 %v272_v61, %v216_v52  ;;  %v273_v3 = vmul.f32 0.375, %v265_v63  ;;  %v136_v4 = vrot.slane %v120_v0, 7 }
  0x2e   :  { %v194_v5 = vsel %vm170_vm1, %v192_v1, %v63_v58 }
  0x2f   :  { %289 = vst.msk [vmem:[%s483_s1 + $0x28] sm:$0xff] %vm283_vm2, %v280_v2  ;;  %v281_v6 = vadd.f32 %v273_v3, %v217_v62  ;;  %v153_v7 = vsel %vm145_vm0, %v120_v0, %v136_v4  ;;  %v249_v8 = vrot.slane %v136_v4, 1 }
  0x30   :  { %v210_v9 = vadd.f32 %v194_v5, %v153_v7  ;;  %v248_v10 = vrot.slane %v153_v7, 1 }
  0x31   :  { %290 = vst.msk [vmem:[%s483_s1 + $0x30] sm:$0xff] %vm283_vm2, %v281_v6 }
  0x32   :  { %v250_v11 = vsel %vm170_vm1, %v248_v10, %v249_v8  ;;  %v218_v12 = vmul.f32 0.125, %v210_v9 }
  0x33   :  { %v266_v13 = vadd.f32 %v250_v11, %v63_v58 }
  0x35   :  { %v274_v14 = vmul.f32 0.375, %v266_v13 }
  0x37   :  { %v282_v15 = vadd.f32 %v274_v14, %v218_v12 }
  0x39   :  { %291 = vst.msk [vmem:[%s483_s1 + $0x38] sm:$0xff] %vm283_vm2, %v282_v15 }

</bundles_post_ra>
